<compile_context>
chip_gen: v6e
topology: v6e:2x2x1
jax: 0.10.0
libtpu: 0.0.40
codegen_flags: <defaults>
</compile_context>

<pallas_src>
import jax
import jax.numpy as jnp
from jax.experimental import pallas as pl
from jax.experimental.pallas import tpu as pltpu


def _cdiv(a, b):
    return -(-a // b)


def _round_up(x, m):
    return _cdiv(x, m) * m


def _build_kernel(*, n_rows, n_cls, tile_rows, tiles_per_core, w_loss, w_nll,
                  any_partial):
    """Kernel body with static config baked in.

    Per valid row r (m = max_c x[r], xm = x - m; m cancels algebraically):
        loss_r = C*lse - sum_c x        = C*log(sum exp(xm)) - sum_c xm
        nll_r  = lse - x[r, target[r]]  =   log(sum exp(xm)) - xm[r, t]
    and the returned scalar is
        eps/(N*C) * sum_r loss_r + (1-eps)/N * sum_r nll_r
    so the blend weights are folded into a single per-row contribution.
    """
    w_log = w_loss * n_cls + w_nll          # coefficient of log(sum exp(xm))

    def row_contrib(x, tgt, masked, row_start):
        tm, c = x.shape
        valid = None
        if masked:
            rows = jax.lax.broadcasted_iota(jnp.int32, (tm, 1), 0) + row_start
            valid = rows < n_rows
            # Sanitize padded / out-of-range rows *before* exp so stale VMEM
            # contents can never produce Inf/NaN (Inf * 0 == NaN).
            x = jnp.where(valid, x, 0.0)
        m = jnp.max(x, axis=-1, keepdims=True)                  # (TM, 1)
        xm = x - m                                              # (TM, C)
        s_exp = jnp.sum(jnp.exp(xm), axis=-1, keepdims=True)    # (TM, 1)
        sum_xm = jnp.sum(xm, axis=-1, keepdims=True)            # (TM, 1)
        cls = jax.lax.broadcasted_iota(jnp.int32, (1, c), 1)    # (1, C)
        g_xm = jnp.sum(jnp.where(cls == tgt, xm, 0.0),
                       axis=-1, keepdims=True)                  # (TM, 1)
        contrib = w_log * jnp.log(s_exp) - w_loss * sum_xm - w_nll * g_xm
        if masked:
            contrib = jnp.where(valid, contrib, 0.0)
        return contrib                                          # (TM, 1)

    def kernel(preds_ref, target_ref, out_ref, acc_ref):
        j = pl.program_id(1)

        @pl.when(j == 0)
        def _init():
            acc_ref[...] = jnp.zeros_like(acc_ref)

        x = preds_ref[...].astype(jnp.float32)   # widen in registers only
        tgt = target_ref[...]                    # (TM, 1) int32

        if not any_partial:
            # Every tile is full and in range: masking is compiled out.
            acc_ref[...] += row_contrib(x, tgt, False, 0)
        else:
            p = pl.program_id(0)
            row_start = (p * tiles_per_core + j) * tile_rows
            is_full = row_start + tile_rows <= n_rows

            @pl.when(is_full)
            def _fast():
                acc_ref[...] += row_contrib(x, tgt, False, row_start)

            @pl.when(jnp.logical_not(is_full))
            def _ragged():
                acc_ref[...] += row_contrib(x, tgt, True, row_start)

        @pl.when(j == tiles_per_core - 1)
        def _finalize():
            partial = jnp.sum(acc_ref[...])
            out_ref[...] = jnp.broadcast_to(partial, out_ref.shape).astype(
                out_ref.dtype)

    return kernel


def label_smoothing_cross_entropy(preds, target, epsilon: float = 0.1,
                                  tile_rows: int | None = None):
    """Label-smoothed cross entropy, reduction='mean' (matches the PyTorch module).

    preds:  (N, C) float logits.  Pass them in their *native* dtype (do NOT upcast
            bf16 logits to f32 in HBM); the kernel widens to f32 internally.
    target: (N,) integer class ids.
    Returns a scalar float32 loss.
    """
    # TODO(synk): only reduction='mean' (the module default) is implemented;
    # 'sum' / 'none' would need a different output contract.
    N, C = preds.shape
    itemsize = jnp.dtype(preds.dtype).itemsize
    # Sub-32-bit dtypes pack along sublanes: keep tiles at the packing multiple.
    sub = {4: 8, 2: 16, 1: 32}.get(itemsize, 8)

    try:
        vmem_cap = int(pltpu.get_tpu_info().vmem_capacity_bytes)
    except Exception:
        vmem_cap = 64 * 1024 * 1024          # conservative: v7x per-TensorCore

    # --- byte-based tile sizing --------------------------------------------
    # VMEM bytes per tile row: double-buffered preds tile + double-buffered
    # (TM,1) int32 target tile (lane-padded to 128) + (TM,1) f32 accumulator.
    per_row = 2 * C * itemsize + 2 * 128 * 4 + 128 * 4
    budget = min(20 * 1024 * 1024, vmem_cap // 3)
    tm = (budget // per_row) if tile_rows is None else int(tile_rows)
    tm = max(sub, (tm // sub) * sub)
    tm = min(tm, _round_up(N, sub))

    n_tiles = _cdiv(N, tm)
    num_cores = 2 if n_tiles >= 2 else 1     # v7x: one grid slice per TensorCore
    tiles_per_core = _cdiv(n_tiles, num_cores)
    any_partial = (n_tiles * tm != N) or (num_cores * tiles_per_core != n_tiles)

    if num_cores * tiles_per_core == n_tiles:
        def tile_idx(p, j):
            return p * tiles_per_core + j
    else:
        # Trailing "dead" grid steps re-read the last (in-range) tile and are
        # fully masked out by the ragged-row path.
        def tile_idx(p, j):
            return jnp.minimum(p * tiles_per_core + j, n_tiles - 1)

    # Deeper pipelining when a huge C forces the row tile down to the minimum.
    n_buf = 3 if (tm <= 2 * sub and n_tiles >= 4) else 2
    preds_kwargs = {"pipeline_mode": pl.Buffered(3)} if n_buf == 3 else {}

    working = (n_buf * tm * C * itemsize      # preds buffers
               + 2 * tm * 128 * 4             # target buffers (lane padded)
               + tm * 128 * 4                 # accumulator
               + 2 * 8 * 128 * 4)             # output block
    vmem_limit = max(min(working + (4 << 20), (vmem_cap * 3) // 4), 16 << 20)

    w_loss = float(epsilon) / float(N * C)
    w_nll = (1.0 - float(epsilon)) / float(N)

    kernel = _build_kernel(n_rows=N, n_cls=C, tile_rows=tm,
                           tiles_per_core=tiles_per_core,
                           w_loss=w_loss, w_nll=w_nll, any_partial=any_partial)

    target2d = target.astype(jnp.int32).reshape(N, 1)

    partials = pl.pallas_call(
        kernel,
        out_shape=jax.ShapeDtypeStruct((num_cores, 8, 128), jnp.float32),
        grid_spec=pltpu.PrefetchScalarGridSpec(
            num_scalar_prefetch=0,
            grid=(num_cores, tiles_per_core),
            in_specs=[
                pl.BlockSpec((tm, C), lambda p, j: (tile_idx(p, j), 0),
                             **preds_kwargs),
                pl.BlockSpec((tm, 1), lambda p, j: (tile_idx(p, j), 0)),
            ],
            out_specs=pl.BlockSpec((1, 8, 128), lambda p, j: (p, 0, 0)),
            scratch_shapes=[pltpu.VMEM((tm, 1), jnp.float32)],
        ),
        compiler_params=pltpu.CompilerParams(
            dimension_semantics=("parallel", "arbitrary"),
            vmem_limit_bytes=int(vmem_limit),
        ),
        cost_estimate=pl.CostEstimate(
            flops=int(8 * N * C),
            transcendentals=int(N * C + 2 * N),
            bytes_accessed=int(N * C * itemsize + N * 4
                               + num_cores * 8 * 128 * 4),
        ),
    )(preds, target2d)

    # One partial per grid slice (TensorCore); the epsilon blend and 1/N, 1/C
    # normalizations are already folded into the per-row weights.
    return jnp.sum(partials[:, 0, 0])


def _reference(preds, target, epsilon=0.1):
    """Pure-JAX reference mirroring the PyTorch module."""
    log_preds = jax.nn.log_softmax(preds.astype(jnp.float32), axis=-1)
    n = preds.shape[-1]
    loss = jnp.mean(-jnp.sum(log_preds, axis=-1))
    nll = jnp.mean(-jnp.take_along_axis(log_preds, target[:, None], axis=-1)[:, 0])
    return epsilon * (loss / n) + (1.0 - epsilon) * nll


if __name__ == "__main__":
    key = jax.random.PRNGKey(0)

    def check(N, C, dtype, tile_rows=None, tol=1e-5):
        k1, k2 = jax.random.split(jax.random.fold_in(key, 131 * N + C))
        preds = jax.random.normal(k1, (N, C), dtype=jnp.float32).astype(dtype)
        target = jax.random.randint(k2, (N,), 0, C, dtype=jnp.int32)
        out = label_smoothing_cross_entropy(preds, target, epsilon=0.1,
                                            tile_rows=tile_rows)
        out = jax.block_until_ready(out)
        ref = _reference(preds, target, epsilon=0.1)
        assert jnp.allclose(out, ref, atol=tol, rtol=tol), (N, C, str(dtype), out, ref)

    # Multi-tile grid, partial last tile, dead-tile clamping (n_tiles=3, 2 slices).
    check(20, 32, jnp.float32, tile_rows=8)
    # Even tiling -> pure fast path (no masking compiled in), bf16 logits.
    check(64, 128, jnp.bfloat16, tile_rows=16, tol=1e-4)
    # Class count not a multiple of the 128-lane width + ragged last tile.
    check(24, 100, jnp.float32, tile_rows=16)
    # Automatic byte-based tile sizing path.
    check(40, 48, jnp.float32)

    print("KERNEL_OK")
</pallas_src>

<mosaic_0001>
module attributes {stable_mosaic.version = 11 : i64} {
  func.func @kernel(%arg0: i32, %arg1: i32, %arg2: memref<8x32xf32, #tpu.memory_space<vmem>>, %arg3: memref<8x1xi32, #tpu.memory_space<vmem>>, %arg4: memref<1x8x128xf32, #tpu.memory_space<vmem>>, %arg5: memref<8x1xf32, #tpu.memory_space<vmem>>) attributes {dimension_semantics = [#tpu.dimension_semantics<parallel>, #tpu.dimension_semantics<arbitrary>], iteration_bounds = array<i64: 2, 2>, scalar_prefetch = 0 : i64, scratch_operands = 1 : i64, tpu.core_type = #tpu.core_type<tc>, window_params = [{transform_indices = @transform_0, window_bounds = array<i64: 8, 32>}, {transform_indices = @transform_1, window_bounds = array<i64: 8, 1>}, {transform_indices = @transform_2, window_bounds = array<i64: 1, 8, 128>}]} {
    %c0_i32 = arith.constant 0 : i32
    %0 = arith.cmpi eq, %arg1, %c0_i32 : i32
    %1 = arith.extui %0 : i1 to i32
    %c0_i32_0 = arith.constant 0 : i32
    %2 = arith.cmpi ne, %1, %c0_i32_0 : i32
    scf.if %2 {
      %cst = arith.constant 0.000000e+00 : f32
      %18 = vector.broadcast %cst : f32 to vector<8x1xf32>
      %c0_8 = arith.constant 0 : index
      %c0_9 = arith.constant 0 : index
      %19 = vector.load %arg5[%c0_8, %c0_9] : memref<8x1xf32, #tpu.memory_space<vmem>>, vector<8x1xf32>
      tpu.vector_store %arg5[%c0_8, %c0_9], %18 {strides = array<i32>} : memref<8x1xf32, #tpu.memory_space<vmem>>, vector<8x1xf32>,
    } else {
    }
    %c0 = arith.constant 0 : index
    %c0_1 = arith.constant 0 : index
    %3 = vector.load %arg2[%c0, %c0_1] : memref<8x32xf32, #tpu.memory_space<vmem>>, vector<8x32xf32>
    %c0_2 = arith.constant 0 : index
    %c0_3 = arith.constant 0 : index
    %4 = vector.load %arg3[%c0_2, %c0_3] : memref<8x1xi32, #tpu.memory_space<vmem>>, vector<8x1xi32>
    %c2_i32 = arith.constant 2 : i32
    %5 = arith.muli %arg0, %c2_i32 : i32
    %6 = arith.addi %5, %arg1 : i32
    %c8_i32 = arith.constant 8 : i32
    %7 = arith.muli %6, %c8_i32 : i32
    %c8_i32_4 = arith.constant 8 : i32
    %8 = arith.addi %7, %c8_i32_4 : i32
    %c20_i32 = arith.constant 20 : i32
    %9 = arith.cmpi sle, %8, %c20_i32 : i32
    %10 = arith.extui %9 : i1 to i32
    %c0_i32_5 = arith.constant 0 : i32
    %11 = arith.cmpi ne, %10, %c0_i32_5 : i32
    scf.if %11 {
      %c0_8 = arith.constant 0 : index
      %c0_9 = arith.constant 0 : index
      %18 = vector.load %arg5[%c0_8, %c0_9] : memref<8x1xf32, #tpu.memory_space<vmem>>, vector<8x1xf32>
      %cst = arith.constant dense<0xFF800000> : vector<8xf32>
      %19 = vector.multi_reduction <maximumf>, %3, %cst [1] : vector<8x32xf32> to vector<8xf32>
      %20 = vector.shape_cast %19 : vector<8xf32> to vector<8x1xf32>
      %21 = vector.broadcast %20 : vector<8x1xf32> to vector<8x32xf32>
      %22 = arith.subf %3, %21 : vector<8x32xf32>
      %23 = math.exp %22 : vector<8x32xf32>
      %cst_10 = arith.constant dense<0.000000e+00> : vector<8xf32>
      %24 = vector.multi_reduction <add>, %23, %cst_10 [1] : vector<8x32xf32> to vector<8xf32>
      %25 = vector.shape_cast %24 : vector<8xf32> to vector<8x1xf32>
      %cst_11 = arith.constant dense<0.000000e+00> : vector<8xf32>
      %26 = vector.multi_reduction <add>, %22, %cst_11 [1] : vector<8x32xf32> to vector<8xf32>
      %27 = vector.shape_cast %26 : vector<8xf32> to vector<8x1xf32>
      %28 = tpu.iota {dimensions = array<i32: 1>} : vector<1x32xi32>
      %29 = vector.broadcast %28 : vector<1x32xi32> to vector<8x32xi32>
      %30 = vector.broadcast %4 : vector<8x1xi32> to vector<8x32xi32>
      %31 = arith.cmpi eq, %29, %30 : vector<8x32xi32>
      %cst_12 = arith.constant 0.000000e+00 : f32
      %32 = vector.broadcast %cst_12 : f32 to vector<8x32xf32>
      %33 = arith.select %31, %22, %32 : vector<8x32xi1>, vector<8x32xf32>
      %cst_13 = arith.constant dense<0.000000e+00> : vector<8xf32>
      %34 = vector.multi_reduction <add>, %33, %cst_13 [1] : vector<8x32xf32> to vector<8xf32>
      %35 = vector.shape_cast %34 : vector<8xf32> to vector<8x1xf32>
      %36 = math.log %25 : vector<8x1xf32>
      %cst_14 = arith.constant 5.000000e-02 : f32
      %37 = vector.broadcast %cst_14 : f32 to vector<8x1xf32>
      %38 = arith.mulf %37, %36 : vector<8x1xf32>
      %cst_15 = arith.constant 1.562500e-04 : f32
      %39 = vector.broadcast %cst_15 : f32 to vector<8x1xf32>
      %40 = arith.mulf %39, %27 : vector<8x1xf32>
      %41 = arith.subf %38, %40 : vector<8x1xf32>
      %cst_16 = arith.constant 4.500000e-02 : f32
      %42 = vector.broadcast %cst_16 : f32 to vector<8x1xf32>
      %43 = arith.mulf %42, %35 : vector<8x1xf32>
      %44 = arith.subf %41, %43 : vector<8x1xf32>
      %45 = arith.addf %18, %44 : vector<8x1xf32>
      %c0_17 = arith.constant 0 : index
      %c0_18 = arith.constant 0 : index
      %46 = vector.load %arg5[%c0_17, %c0_18] : memref<8x1xf32, #tpu.memory_space<vmem>>, vector<8x1xf32>
      tpu.vector_store %arg5[%c0_17, %c0_18], %45 {strides = array<i32>} : memref<8x1xf32, #tpu.memory_space<vmem>>, vector<8x1xf32>,
    } else {
    }
    %true = arith.constant true
    %12 = arith.xori %9, %true : i1
    %13 = arith.extui %12 : i1 to i32
    %c0_i32_6 = arith.constant 0 : i32
    %14 = arith.cmpi ne, %13, %c0_i32_6 : i32
    scf.if %14 {
      %c0_8 = arith.constant 0 : index
      %c0_9 = arith.constant 0 : index
      %18 = vector.load %arg5[%c0_8, %c0_9] : memref<8x1xf32, #tpu.memory_space<vmem>>, vector<8x1xf32>
      %19 = tpu.iota {dimensions = array<i32: 0>} : vector<8x1xi32>
      %20 = vector.broadcast %7 : i32 to vector<8x1xi32>
      %21 = arith.addi %19, %20 : vector<8x1xi32>
      %c20_i32_10 = arith.constant 20 : i32
      %22 = vector.broadcast %c20_i32_10 : i32 to vector<8x1xi32>
      %23 = arith.cmpi slt, %21, %22 : vector<8x1xi32>
      %cst = arith.constant 0.000000e+00 : f32
      %24 = vector.shape_cast %23 : vector<8x1xi1> to vector<8x1xi1>
      %25 = vector.broadcast %24 : vector<8x1xi1> to vector<8x32xi1>
      %26 = vector.broadcast %cst : f32 to vector<8x32xf32>
      %27 = arith.select %25, %3, %26 : vector<8x32xi1>, vector<8x32xf32>
      %cst_11 = arith.constant dense<0xFF800000> : vector<8xf32>
      %28 = vector.multi_reduction <maximumf>, %27, %cst_11 [1] : vector<8x32xf32> to vector<8xf32>
      %29 = vector.shape_cast %28 : vector<8xf32> to vector<8x1xf32>
      %30 = vector.broadcast %29 : vector<8x1xf32> to vector<8x32xf32>
      %31 = arith.subf %27, %30 : vector<8x32xf32>
      %32 = math.exp %31 : vector<8x32xf32>
      %cst_12 = arith.constant dense<0.000000e+00> : vector<8xf32>
      %33 = vector.multi_reduction <add>, %32, %cst_12 [1] : vector<8x32xf32> to vector<8xf32>
      %34 = vector.shape_cast %33 : vector<8xf32> to vector<8x1xf32>
      %cst_13 = arith.constant dense<0.000000e+00> : vector<8xf32>
      %35 = vector.multi_reduction <add>, %31, %cst_13 [1] : vector<8x32xf32> to vector<8xf32>
      %36 = vector.shape_cast %35 : vector<8xf32> to vector<8x1xf32>
      %37 = tpu.iota {dimensions = array<i32: 1>} : vector<1x32xi32>
      %38 = vector.broadcast %37 : vector<1x32xi32> to vector<8x32xi32>
      %39 = vector.broadcast %4 : vector<8x1xi32> to vector<8x32xi32>
      %40 = arith.cmpi eq, %38, %39 : vector<8x32xi32>
      %cst_14 = arith.constant 0.000000e+00 : f32
      %41 = vector.broadcast %cst_14 : f32 to vector<8x32xf32>
      %42 = arith.select %40, %31, %41 : vector<8x32xi1>, vector<8x32xf32>
      %cst_15 = arith.constant dense<0.000000e+00> : vector<8xf32>
      %43 = vector.multi_reduction <add>, %42, %cst_15 [1] : vector<8x32xf32> to vector<8xf32>
      %44 = vector.shape_cast %43 : vector<8xf32> to vector<8x1xf32>
      %45 = math.log %34 : vector<8x1xf32>
      %cst_16 = arith.constant 5.000000e-02 : f32
      %46 = vector.broadcast %cst_16 : f32 to vector<8x1xf32>
      %47 = arith.mulf %46, %45 : vector<8x1xf32>
      %cst_17 = arith.constant 1.562500e-04 : f32
      %48 = vector.broadcast %cst_17 : f32 to vector<8x1xf32>
      %49 = arith.mulf %48, %36 : vector<8x1xf32>
      %50 = arith.subf %47, %49 : vector<8x1xf32>
      %cst_18 = arith.constant 4.500000e-02 : f32
      %51 = vector.broadcast %cst_18 : f32 to vector<8x1xf32>
      %52 = arith.mulf %51, %44 : vector<8x1xf32>
      %53 = arith.subf %50, %52 : vector<8x1xf32>
      %cst_19 = arith.constant 0.000000e+00 : f32
      %54 = vector.broadcast %cst_19 : f32 to vector<8x1xf32>
      %55 = arith.select %23, %53, %54 : vector<8x1xi1>, vector<8x1xf32>
      %56 = arith.addf %18, %55 : vector<8x1xf32>
      %c0_20 = arith.constant 0 : index
      %c0_21 = arith.constant 0 : index
      %57 = vector.load %arg5[%c0_20, %c0_21] : memref<8x1xf32, #tpu.memory_space<vmem>>, vector<8x1xf32>
      tpu.vector_store %arg5[%c0_20, %c0_21], %56 {strides = array<i32>} : memref<8x1xf32, #tpu.memory_space<vmem>>, vector<8x1xf32>,
    } else {
    }
    %c1_i32 = arith.constant 1 : i32
    %15 = arith.cmpi eq, %arg1, %c1_i32 : i32
    %16 = arith.extui %15 : i1 to i32
    %c0_i32_7 = arith.constant 0 : i32
    %17 = arith.cmpi ne, %16, %c0_i32_7 : i32
    scf.if %17 {
      %c0_8 = arith.constant 0 : index
      %c0_9 = arith.constant 0 : index
      %18 = vector.load %arg5[%c0_8, %c0_9] : memref<8x1xf32, #tpu.memory_space<vmem>>, vector<8x1xf32>
      %19 = vector.shape_cast %18 : vector<8x1xf32> to vector<1x8x1xf32>
      %cst = arith.constant dense<0.000000e+00> : vector<1xf32>
      %20 = vector.multi_reduction <add>, %19, %cst [1, 2] : vector<1x8x1xf32> to vector<1xf32>
      %21 = vector.shape_cast %20 : vector<1xf32> to vector<1x1x1xf32>
      %22 = vector.extract %21[0, 0, 0] : f32 from vector<1x1x1xf32>
      %23 = vector.broadcast %22 : f32 to vector<1x8x128xf32>
      %c0_10 = arith.constant 0 : index
      %c0_11 = arith.constant 0 : index
      %c0_12 = arith.constant 0 : index
      %24 = vector.load %arg4[%c0_10, %c0_11, %c0_12] : memref<1x8x128xf32, #tpu.memory_space<vmem>>, vector<1x8x128xf32>
      tpu.vector_store %arg4[%c0_10, %c0_11, %c0_12], %23 {strides = array<i32>} : memref<1x8x128xf32, #tpu.memory_space<vmem>>, vector<1x8x128xf32>,
    } else {
    }
    return
  }
  func.func @transform_0(%arg0: i32, %arg1: i32) -> (i32, i32) {
    %c2_i32 = arith.constant 2 : i32
    %0 = arith.muli %arg0, %c2_i32 : i32
    %1 = arith.addi %0, %arg1 : i32
    %c2_i32_0 = arith.constant 2 : i32
    %2 = arith.minsi %1, %c2_i32_0 : i32
    %c0_i32 = arith.constant 0 : i32
    %c0_i32_1 = arith.constant 0 : i32
    return %2, %c0_i32 : i32, i32
  }
  func.func @transform_1(%arg0: i32, %arg1: i32) -> (i32, i32) {
    %c2_i32 = arith.constant 2 : i32
    %0 = arith.muli %arg0, %c2_i32 : i32
    %1 = arith.addi %0, %arg1 : i32
    %c2_i32_0 = arith.constant 2 : i32
    %2 = arith.minsi %1, %c2_i32_0 : i32
    %c0_i32 = arith.constant 0 : i32
    %c0_i32_1 = arith.constant 0 : i32
    return %2, %c0_i32 : i32, i32
  }
  func.func @transform_2(%arg0: i32, %arg1: i32) -> (i32, i32, i32) {
    %c0_i32 = arith.constant 0 : i32
    %c0_i32_0 = arith.constant 0 : i32
    %c0_i32_1 = arith.constant 0 : i32
    return %arg0, %c0_i32, %c0_i32_0 : i32, i32, i32
  }
}

</mosaic_0001>

<bundles_post_ra>
// kernel: tpu_custom_call.1
= control target key start
LH: loop header
LB: loop body
LE: loop exit
PB: predicated region body
PF: predicated region fallthrough
CT: control target
= control target key end

     0   :  { %7 = vsyncpa [#allocation4], 0  ;;  %s822_s0 = inlined_call_operand.vmem [shape: f32[20,32], index: 0, kind: input, shape index: {}]   ;;  %s823_s1 = inlined_call_operand.vmem [shape: s32[20,1], index: 1, kind: input, shape index: {}]   ;;  %s824_s2 = inlined_call_operand.hbm [shape: f32[2,8,128], index: 2, kind: output, shape index: {}]  }
   0x1   :  { %9 = vsyncpa [#allocation4 + $0x1], 0  ;;  %s664_s9 = smov 0   ;;  %s666_s10 = smov 0  }
   0x2   :  { %s668_s11 = smov 0   ;;  %s670_s12 = smov 0  }
   0x3   :  { %s672_s13 = smov 0   ;;  %s674_s14 = smov 0  }
   0x4   :  { %s676_s15 = smov 0   ;;  %s678_s16 = smov 0  }
   0x5 LB: > { %s435_s17 = sadd.s32 4294967295, %s643_s16   ;;  %s436_s18 = sadd.s32 4294967294, %s643_s16   ;;  %s643_s16 = sphi %s678_s16, %s15_s16   ;;  %s639_s15 = sphi %s676_s15, %s833_s15   ;;  %s635_s14 = sphi %s674_s14, %s832_s14   ;;  %s631_s13 = sphi %s672_s13, %s831_s13   ;;  %s627_s12 = sphi %s670_s12, %s830_s12   ;;  %s623_s11 = sphi %s668_s11, %s829_s11   ;;  %s619_s10 = sphi %s666_s10, %s828_s10   ;;  %s615_s9 = sphi %s664_s9, %s827_s9  }
   0x6   : > { %s24_s19 = sadd.s32 1, %s635_s14  ;;  %s27_s20 = sadd.s32 1, %s639_s15 }
   0x7   : > { %p25_p0 = scmp.ge.s32.totalorder %s24_s19, 2  ;;  %p112_p1 = scmp.ne.s32.totalorder %s623_s11, %s619_s10 }
   0x8   : > { %p113_p2 = scmp.eq.s32.totalorder %s435_s17, 3  ;;  %p118_p4 = scmp.ne.s32.totalorder %s619_s10, %s615_s9 }
   0x9   : > { %s835_s19 = smov (%p25_p0, %s24_s19), 0  ;;  %s837_s20 = smov (!%p25_p0, %s27_s20), %s639_s15 }
   0xa   : > { %p713_p3 = por %p113_p2, %p112_p1  ;;  %p29_p5 = scmp.ge.s32.totalorder %s837_s20, 2 }
   0xb   : > { %p119_p6 = scmp.eq.s32.totalorder %s436_s18, 3  ;;  %p443_p7 = scmp.ge.s32.totalorder %s643_s16, 1 }
   0xc   : > { %p167_p8 = scmp.lt.s32.totalorder %s643_s16, 5  ;;  %s839_s20 = smov (%p29_p5, %s837_s20), 0 }
   0xd   : > { %p723_p9 = por %p119_p6, %p118_p4  ;;  %s99_s23 = ssub.s32 %s639_s15, %s839_s20 }
   0xe   : > { %p168_p10 = pnand %p443_p7, %p167_p8  ;;  %s102_s24 = sadd.s32 1, %s623_s11 }
   0xf   : > { %p100_p11 = scmp.eq.s32.totalorder %s99_s23, 0  ;;  %s197_s26 = sand.u32 (!%p168_p10), 1, %s619_s10  }
  0x10   : > { %171 = sbr.rel (%p168_p10) target bundleno = 931 (0x3a3), region = 28  ;;  %s445_s27 = sshll.u32 (!%p168_p10), %s631_s13, 1 }
  0x11   : > { %s731_s25 = scalar_select %p100_p11, %s623_s11, %s102_s24  }
  0x12   : > { %s737_s28 = sshll.u32 (!%p168_p10), %s197_s26, 3  ;;  %s740_s29 = sadd.s32 (!%p168_p10), %s627_s12, %s445_s27 }
  0x13   : > { %p202_p12 = scmp.lt.s32.totalorder (!%p168_p10), %s740_s29, 2  ;;  %s199_s18 = scalar_lea.vmem (!%p168_p10), [#allocation3], %s737_s28 }
  0x14   : > { %p455_p13 = scmp.ne.s32.totalorder (!%p168_p10), %s627_s12, 0 }
  0x15   : > { %s203_s30 = scalar_select %p202_p12, %s740_s29, 2 }
  0x16   : > { %227 = sbr.rel (%p455_p13) target bundleno = 29 (0x1d), region = 32 }
  0x17   : > { %s841_s30 = smov (!%p202_p12, %s203_s30), 2 }
  0x18   : > { %s449_s3 = sshll.u32 %s841_s30, 3 }
  0x19   : > { %s207_s6 = scalar_lea.vmem %s822_s0, %s449_s3  ;;  %s219_s17 = scalar_lea.vmem %s823_s1, %s449_s3 }
  0x1b   : > { %vm228_vm0 = vcmask 7168   ;;  %v645_v0 = vmov 0.0  }
  0x1c   : > { %229 = vst.msk [vmem:[#allocation2] sm:$0xff] %vm228_vm0, %v645_v0 }
  0x1d PF: > { %v230_v1 = vld [vmem:[%s207_s6] sm:$0xff]  ;;  %s457_s23 = sshll.u32 %s740_s29, 3 }
  0x1e   : > { %v231_v2 = vld [vmem:[%s219_s17] sm:$0xff]  ;;  %s755_s24 = sadd.s32 8, %s457_s23 }
  0x1f   : > { %p458_p0 = scmp.gt.s32.totalorder %s755_s24, 20 }
  0x21   : > { %239 = sbr.rel (%p458_p0) target bundleno = 360 (0x168), region = 36 }
  0x26   : > { %vm241_vm1 = vcmask 261120   ;;  %v646_v4 = vmov 0   ;;  %v254_v8 = vlaneseq  ;;  %v240_v25 = vld [vmem:[#allocation2] sm:$0xff]  ;;  %vm272_vm3 = vcmask 7168  }
  0x27   : > { %v242_v3 = vsel %vm241_vm1, %v230_v1, -inf  ;;  %541 = vset.pattern.permute.xlu0 %v646_v4 }
  0x28   : > { %243 = vmax.xlane.f32.xlu0 %v242_v3  ;;  %v255_v9 = vand.u32 127, %v254_v8 }
  0x3e   : > { %257 = vperm.xlu0 %541, %v231_v2  }
  0xb1   : > { %v244_v5 = vpop.xlane.xlu0 %243 }
  0xb2   : > { %v245_v6 = vsub.f32 %v230_v1, %v244_v5 }
  0xb4   : > { %v246_v7 = vmul.f32 1.442695, %v245_v6  ;;  %v251_v13 = vsel %vm241_vm1, %v245_v6, 0.0 }
  0xb6   : > { %542 = vpow2.f32 %v246_v7 }
  0xb9   : > { %v258_v11 = vpop.permute.xlu0 %257 }
  0xba   : > { %vm259_vm2 = vcmp.eq.s32.totalorder %v255_v9, %v258_v11 }
  0xbb   : > { %v260_v14 = vsel %vm259_vm2, %v245_v6, 0.0 }
  0xbc   : > { %v261_v15 = vsel %vm241_vm1, %v260_v14, 0.0 }
  0xc3   : > { %v543_v10 = vpop.eup %542 }
  0xc4   : > { %v248_v12 = vsel %vm241_vm1, %v543_v10, 0.0 }
  0xc5   : > { %249 = vadd.xlane.f32.xlu1 %v248_v12 }
  0xc9   : > { %252 = vadd.xlane.f32.xlu1 %v251_v13 }
  0xcd   : > { %262 = vadd.xlane.f32.xlu1 %v261_v15 }
 0x14e   : > { %v250_v16 = vpop.xlane.xlu1 %249 }
 0x14f   : > { %544 = vlog2.f32 %v250_v16 }
 0x152   : > { %v253_v17 = vpop.xlane.xlu1 %252 }
 0x153   : > { %v267_v22 = vmul.f32 0.00015625, %v253_v17 }
 0x156   : > { %v263_v20 = vpop.xlane.xlu1 %262 }
 0x157   : > { %v269_v24 = vmul.f32 0.045, %v263_v20 }
 0x15c   : > { %v545_v18 = vpop.eup %544 }
 0x15d   : > { %v265_v19 = vmul.f32 0.6931472, %v545_v18 }
 0x15f   : > { %v266_v21 = vmul.f32 0.05, %v265_v19 }
 0x161   : > { %v268_v23 = vsub.f32 %v266_v21, %v267_v22 }
 0x163   : > { %v270_v26 = vsub.f32 %v268_v23, %v269_v24 }
 0x165   : > { %v271_v27 = vadd.f32 %v270_v26, %v240_v25 }
 0x167   : > { %273 = vst.msk [vmem:[#allocation2] sm:$0xff] %vm272_vm3, %v271_v27 }
 0x168 PF: > { %p459_p1 = scmp.le.s32.totalorder %s755_s24, 20 }
 0x16a   : > { %277 = sbr.rel (%p459_p1) target bundleno = 697 (0x2b9), region = 40 }
 0x16f   : > { %v279_v28 = vlaneseq  ;;  %v281_v29 = vstv %s457_s23  ;;  %v647_v30 = vmov 0   ;;  %vm287_vm4 = vcmask 261120   ;;  %v278_v54 = vld [vmem:[#allocation2] sm:$0xff] }
 0x170   : > { %546 = vset.pattern.permute.xlu0 %v647_v30  ;;  %vm319_vm7 = vcmask 7168  }
 0x171   : > { %v280_v31 = vshrl.u32 %v279_v28, 7  ;;  %v301_v38 = vand.u32 127, %v279_v28 }
 0x173   : > { %v282_v32 = vadd.s32 %v281_v29, %v280_v31 }
 0x175   : > { %vm283_vm5 = vcmp.lt.s32.totalorder %v282_v32, 20 }
 0x176   : > { %v286_v33 = vsel %vm283_vm5, %v230_v1, 0.0 }
 0x177   : > { %v288_v34 = vsel %vm287_vm4, %v286_v33, -inf }
 0x178   : > { %289 = vmax.xlane.f32.xlu0 %v288_v34 }
 0x18e   : > { %303 = vperm.xlu0 %546, %v231_v2  }
 0x201   : > { %v290_v35 = vpop.xlane.xlu0 %289 }
 0x202   : > { %v291_v36 = vsub.f32 %v286_v33, %v290_v35 }
 0x204   : > { %v292_v37 = vmul.f32 1.442695, %v291_v36  ;;  %v297_v42 = vsel %vm287_vm4, %v291_v36, 0.0 }
 0x206   : > { %547 = vpow2.f32 %v292_v37 }
 0x209   : > { %v304_v40 = vpop.permute.xlu0 %303 }
 0x20a   : > { %vm305_vm6 = vcmp.eq.s32.totalorder %v301_v38, %v304_v40 }
 0x20b   : > { %v306_v43 = vsel %vm305_vm6, %v291_v36, 0.0 }
 0x20c   : > { %v307_v44 = vsel %vm287_vm4, %v306_v43, 0.0 }
 0x213   : > { %v548_v39 = vpop.eup %547 }
 0x214   : > { %v294_v41 = vsel %vm287_vm4, %v548_v39, 0.0 }
 0x215   : > { %295 = vadd.xlane.f32.xlu1 %v294_v41 }
 0x219   : > { %298 = vadd.xlane.f32.xlu1 %v297_v42 }
 0x21d   : > { %308 = vadd.xlane.f32.xlu1 %v307_v44 }
 0x29e   : > { %v296_v45 = vpop.xlane.xlu1 %295 }
 0x29f   : > { %549 = vlog2.f32 %v296_v45 }
 0x2a2   : > { %v299_v46 = vpop.xlane.xlu1 %298 }
 0x2a3   : > { %v313_v51 = vmul.f32 0.00015625, %v299_v46 }
 0x2a6   : > { %v309_v49 = vpop.xlane.xlu1 %308 }
 0x2a7   : > { %v315_v53 = vmul.f32 0.045, %v309_v49 }
 0x2ac   : > { %v550_v47 = vpop.eup %549 }
 0x2ad   : > { %v311_v48 = vmul.f32 0.6931472, %v550_v47 }
 0x2af   : > { %v312_v50 = vmul.f32 0.05, %v311_v48 }
 0x2b1   : > { %v314_v52 = vsub.f32 %v312_v50, %v313_v51 }
 0x2b3   : > { %v316_v55 = vsub.f32 %v314_v52, %v315_v53 }
 0x2b5   : > { %v317_v56 = vsel %vm283_vm5, %v316_v55, 0.0 }
 0x2b6   : > { %v318_v57 = vadd.f32 %v317_v56, %v278_v54 }
 0x2b8   : > { %320 = vst.msk [vmem:[#allocation2] sm:$0xff] %vm319_vm7, %v318_v57 }
 0x2b9 PF: > { %p460_p2 = scmp.ne.s32.totalorder %s627_s12, 1 }
 0x2bb   : > { %324 = sbr.rel (%p460_p2) target bundleno = 908 (0x38c), region = 44 }
 0x2c0   : > { %v325_v58 = vld [vmem:[#allocation2] sm:$0xff]  ;;  %vm326_vm8 = vcmask 7168  }
 0x2c1   : > { %v327_v59 = vsel %vm326_vm8, %v325_v58, 0.0 }
 0x2c2   : > { %328 = vadd.xlane.f32.xlu0 %v327_v59 }
 0x34b   : > { %v329_v60 = vpop.xlane.xlu0 %328 }
 0x34c   : > { %v330_v61 = vrot.slane %v329_v60, 4 }
 0x34e   : > { %v331_v62 = vadd.f32 %v330_v61, %v329_v60 }
 0x350   : > { %v332_v63 = vrot.slane %v331_v62, 2 }
 0x352   : > { %v333_v0 = vadd.f32 %v332_v63, %v331_v62 }
 0x354   : > { %v334_v1 = vrot.slane %v333_v0, 1 }
 0x356   : > { %v335_v2 = vadd.f32 %v334_v1, %v333_v0 }
 0x358   : > { %465 = vpush %v335_v2 }
 0x389   : > { %s466_s27 = spop %465 }
 0x38a   : > { %v337_v3 = vstv %s466_s27 }
 0x38b   : > { %338 = vst [vmem:[%s199_s18] sm:$0xff] %v337_v3 }
 0x38c PF: > { %s462_s12 = sshll.u32 %s631_s13, 7  ;;  %s353_s4 = sshll.u32 %s199_s18, 4  ;;  %s354_s4 = int_to_ptr.vmem [resolvable:$true] %s353_s4 }
 0x38d   : > { %s351_s3 = scalar_lea.hbm %s824_s2, %s462_s12  ;;  %s340_s5 = scalar_lea.sflag [#allocation4], %s197_s26 }
 0x38e   : > { %s551_s6 = scalar_lea.vmem %s354_s4, 128  ;;  %s648_s7 = smov [#allocation3]  }
 0x38f   : > { %p552_p4 = scmp.ne.s32.totalorder %s354_s4, %s551_s6  ;;  %s555_s8 = sshll.u32 %s648_s7, 4  ;;  %s556_s8 = int_to_ptr.vmem [resolvable:$false] %s555_s8 }
 0x390   : > { %s557_s17 = scalar_lea.vmem %s556_s8, 256  ;;  %p558_p7 = scmp.lt.s32.totalorder %s354_s4, %s556_s8 }
 0x391   : > { %p553_p5 = pnand %p552_p4, %p713_p3  ;;  %p559_p8 = scmp.lt.s32.totalorder %s557_s17, %s551_s6 }
 0x393   : > { %p554_p6 = pneg %p553_p5  ;;  %p560_p10 = por %p559_p8, %p558_p7 }
 0x395   : > { %p561_p11 = pnand %p560_p10, %p554_p6 }
 0x397   : > { %564 = shalt.err (!%p561_p11)
}
 0x398   : > { %s565_s13 = scalar_lea.hbm %s351_s3, 128  ;;  %s569_s18 = scalar_lea.hbm %s824_s2, 256 }
 0x399   : > { %p566_p12 = scmp.ne.s32.totalorder %s351_s3, %s565_s13  ;;  %p570_p1 = scmp.lt.s32.totalorder %s351_s3, %s824_s2 }
 0x39a   : > { %p571_p2 = scmp.lt.s32.totalorder %s569_s18, %s565_s13 }
 0x39b   : > { %p567_p13 = pnand %p566_p12, %p713_p3 }
 0x39c   : > { %p572_p4 = por %p571_p2, %p570_p1 }
 0x39d   : > { %p568_p0 = pneg %p567_p13 }
 0x39f   : > { %p573_p5 = pnand %p572_p4, %p568_p0 }
 0x3a1   : > { %576 = shalt.err (!%p573_p5)
}
 0x3a2   : > { %467 = dma.vmem_to_hbm [thread:$0]  (%p713_p3), %s354_s4, 128, %s351_s3, %s340_s5  }
 0x3a3 PF: > { %p473_p6 = scmp.ge.s32.totalorder %s643_s16, 2  ;;  %s365_s27 = sand.u32 1, %s615_s9  }
 0x3a4   : > { %s366_s12 = scalar_lea.sflag [#allocation4], %s365_s27 }
 0x3a5   : > { %p470_p7 = pnand %p473_p6, %p723_p9 }
 0x3a7   : > { %p471_p8 = pneg %p470_p7 }
 0x3a9   : > { %610 = dma.done.wait (%p471_p8), %s366_s12, 128  }
 0x3aa   : > { %612 = vsyncadd (%p471_p8), %s366_s12, 4294967168  ;;  %s15_s16 = sadd.s32 1, %s643_s16   ;;  %s827_s9 = smov %s619_s10 }
 0x3ab   : > { %p12_p10 = scmp.ge.s32.totalorder %s15_s16, 6   ;;  %s828_s10 = smov %s623_s11 }
 0x3ac   : > { %s829_s11 = smov %s731_s25  ;;  %s830_s12 = smov %s635_s14 }
 0x3ad   : > { %s831_s13 = smov %s639_s15  ;;  %s832_s14 = smov %s835_s19 }
 0x3ae   : > { %s833_s15 = smov %s839_s20  ;;  %14 = sbr.rel (!%p12_p10) target bundleno = 5 (0x5), region = 82 }
 0x3b3   :  { %371 = vsyncpa [#allocation4], 1 }
 0x3b4   :  { %373 = vsyncpa [#allocation4 + $0x1], 1 }

</bundles_post_ra>
